<compile_context>
chip_gen: v5e
topology: v5e:2x2
jax: 0.10.0
libtpu: 0.0.40
codegen_flags: <defaults>
</compile_context>

<pallas_src>
import jax
import jax.numpy as jnp
from jax.experimental import pallas as pl
from jax.experimental.pallas import tpu as pltpu

HIDDEN_SHAPE_1 = 256
HIDDEN_SHAPE_2 = 256
HIDDEN_SHAPE_3 = 128
HIDDEN_SHAPE_4 = 64

_LANE = 128
_MIN_TILE = 16  # bf16 sublane packing -> batch-tile rows in multiples of 16


def _round_up(v, m):
    return (v + m - 1) // m * m


def _choose_tile(B, tile_b):
    """Pick (tb, b_pad).  Tiny batch -> single tile; B >= 32 -> at least two
    grid steps (so both v7x TensorCores get a tile) while preferring large
    tiles (tile_b) to amortize the ~0.35 us per-grid-step overhead."""
    if B <= 2 * _MIN_TILE:
        tb = _round_up(max(B, 1), _MIN_TILE)
    else:
        half = -(-B // 2)
        tb = min(_round_up(tile_b, _MIN_TILE), _round_up(half, _MIN_TILE))
    b_pad = _round_up(B, tb)
    return tb, b_pad


def _make_kernel(in_pad):
    """Kernel factory.  in_pad = zero-padded input-feature width (mult of 16).

    Packed weight layout (bf16):
      wpa = [w1 (in_pad,256) ; w2 (256,256)]                      -> (in_pad+256, 256)
      wpb = [w3 (256,128) ; w4 (128,128) ; w5 (128,128) ; w6 (128,128)] -> (640, 128)
    bias pack (f32): (8, 256), row l = layer-l bias zero-padded to 256 lanes.
    All slice starts below are multiples of 16 so bf16 sublane-packed slices
    stay free views.
    """

    def kernel(x_ref, wpa_ref, wpb_ref, b_ref, out_ref):
        def layer(h_bf16, w_bf16, bias_row, out_w, relu):
            # bf16 MXU matmul, f32 accumulate, f32 bias+ReLU epilogue.
            y = jnp.dot(h_bf16, w_bf16, preferred_element_type=jnp.float32)
            y = y + b_ref[bias_row:bias_row + 1, :out_w]
            if relu:
                y = jnp.maximum(y, 0.0)
            return y

        h = layer(x_ref[...], wpa_ref[0:in_pad, :], 0, 256, True)
        h = layer(h.astype(jnp.bfloat16), wpa_ref[in_pad:in_pad + 256, :], 1, 256, True)
        h = layer(h.astype(jnp.bfloat16), wpb_ref[0:256, :], 2, 128, True)
        h = layer(h.astype(jnp.bfloat16), wpb_ref[256:384, :], 3, 128, True)
        h = layer(h.astype(jnp.bfloat16), wpb_ref[384:512, :], 4, 128, True)
        # nn.Dropout() -> identity in eval mode.
        y = layer(h.astype(jnp.bfloat16), wpb_ref[512:640, :], 5, 128, False)
        out_ref[...] = y.astype(out_ref.dtype)  # bf16 lane-dense store

    return kernel


def pack_fc_dqn_params(params, input_shape, n_actions):
    """params: 6 x (W_t, b) with W_t (in, out) [torch weight pre-transposed],
    b (1, out) or (out,).  Returns (wpa_bf16, wpb_bf16, bias_pack_f32, in_pad).

    Call ONCE at parameter-load time (not per forward)."""
    assert len(params) == 6
    assert n_actions <= _LANE, "packing scheme assumes n_actions <= 128"
    in_pad = _round_up(max(input_shape, 1), 16)

    def pad_w(w, rows, cols):
        w = w.astype(jnp.float32)
        return jnp.zeros((rows, cols), jnp.float32).at[:w.shape[0], :w.shape[1]].set(w)

    (w1, b1), (w2, b2), (w3, b3), (w4, b4), (w5, b5), (w6, b6) = params

    w1p = pad_w(w1, in_pad, 256)
    w2p = pad_w(w2, 256, 256)
    w3p = pad_w(w3, 256, 128)
    w4p = pad_w(w4, 128, 128)   # 128 -> 64 padded to 128 output lanes
    w5p = pad_w(w5, 128, 128)   # 64 -> 64 padded both ways
    w6p = pad_w(w6, 128, 128)   # 64 -> n_actions padded both ways

    wpa = jnp.concatenate([w1p, w2p], axis=0).astype(jnp.bfloat16)
    wpb = jnp.concatenate([w3p, w4p, w5p, w6p], axis=0).astype(jnp.bfloat16)

    bias_pack = jnp.zeros((8, 256), jnp.float32)
    for i, b in enumerate([b1, b2, b3, b4, b5, b6]):
        row = jnp.reshape(b, (1, -1)).astype(jnp.float32)
        bias_pack = bias_pack.at[i:i + 1, :row.shape[1]].set(row)

    return wpa, wpb, bias_pack, in_pad


def make_fc_dqn_forward(params, input_shape, n_actions, *, tile_b=512,
                        out_dtype=jnp.float32, vmem_limit_bytes=None):
    """Pack parameters once and return a jitted forward: x[B, input_shape] f32
    -> [B, n_actions] out_dtype.  Packing, padding and output slicing all stay
    out of the steady-state per-call cost (packing is hoisted; pad/slice are
    fused inside the same jit region as the pallas_call)."""
    wpa, wpb, bias_pack, in_pad = pack_fc_dqn_params(params, input_shape, n_actions)
    kernel = _make_kernel(in_pad)

    cp_kwargs = dict(dimension_semantics=("parallel",))  # v7x megacore sharding
    if vmem_limit_bytes is not None:
        cp_kwargs["vmem_limit_bytes"] = vmem_limit_bytes
    compiler_params = pltpu.CompilerParams(**cp_kwargs)

    def _forward(x):
        B = x.shape[0]
        tb, b_pad = _choose_tile(B, tile_b)
        grid = (b_pad // tb,)

        x_pad = jnp.zeros((b_pad, in_pad), jnp.bfloat16)
        x_pad = x_pad.at[:B, :input_shape].set(x.astype(jnp.bfloat16))

        def const_spec(shape):
            # Same block index every grid step -> stays resident in VMEM.
            return pl.BlockSpec(shape, lambda i: (0, 0))

        out = pl.pallas_call(
            kernel,
            out_shape=jax.ShapeDtypeStruct((b_pad, _LANE), jnp.bfloat16),
            grid=grid,
            in_specs=[
                pl.BlockSpec((tb, in_pad), lambda i: (i, 0)),   # x: batch-tiled
                const_spec(wpa.shape),                          # packed weights
                const_spec(wpb.shape),
                const_spec(bias_pack.shape),                    # packed biases
            ],
            out_specs=pl.BlockSpec((tb, _LANE), lambda i: (i, 0)),
            compiler_params=compiler_params,
        )(x_pad, wpa, wpb, bias_pack)

        return out[:B, :n_actions].astype(out_dtype)

    return jax.jit(_forward)


def init_fc_dqn_params(key, input_shape, n_actions):
    """Deterministic init mimicking PyTorch Linear default:
    U(-1/sqrt(fan_in), 1/sqrt(fan_in)) for both weight and bias."""
    dims = [input_shape, HIDDEN_SHAPE_1, HIDDEN_SHAPE_2, HIDDEN_SHAPE_3,
            HIDDEN_SHAPE_4, HIDDEN_SHAPE_4, n_actions]
    params = []
    for i in range(len(dims) - 1):
        fan_in, fan_out = dims[i], dims[i + 1]
        key, kw, kb = jax.random.split(key, 3)
        bound = 1.0 / jnp.sqrt(fan_in)
        # store transposed weight (in, out) so kernel does x @ W
        w_t = jax.random.uniform(kw, (fan_in, fan_out), jnp.float32,
                                 minval=-bound, maxval=bound)
        b = jax.random.uniform(kb, (1, fan_out), jnp.float32,
                               minval=-bound, maxval=bound)
        params.append((w_t, b))
    return params


def fc_dqn_reference_f32(x, params):
    h = x
    for i, (w, b) in enumerate(params):
        h = h @ w + b
        if i < len(params) - 1:
            h = jnp.maximum(h, 0.0)
    return h


def fc_dqn_reference_bf16(x, params):
    """Emulates kernel numerics: bf16 matmul operands, f32 accumulate/epilogue,
    final result stored as bf16."""
    h = x.astype(jnp.bfloat16)
    for i, (w, b) in enumerate(params):
        y = jnp.dot(h, w.astype(jnp.bfloat16), preferred_element_type=jnp.float32)
        y = y + b.astype(jnp.float32)
        if i < len(params) - 1:
            y = jnp.maximum(y, 0.0)
            h = y.astype(jnp.bfloat16)
        else:
            h = y.astype(jnp.bfloat16).astype(jnp.float32)  # kernel's bf16 store
    return h


if __name__ == "__main__":
    key = jax.random.PRNGKey(0)
    input_shape = 32
    n_actions = 8

    kx, kp, kx2 = jax.random.split(key, 3)
    params = init_fc_dqn_params(kp, input_shape, n_actions)

    # Pack ONCE; forward is a jitted closure over the packed weights.
    forward = make_fc_dqn_forward(params, input_shape, n_actions)

    # --- tiny batch (single grid step / single tile) ---
    x = jax.random.normal(kx, (8, input_shape), jnp.float32)
    out = jax.block_until_ready(forward(x))
    assert out.shape == (8, n_actions)
    ref_bf16 = fc_dqn_reference_bf16(x, params)
    ref_f32 = fc_dqn_reference_f32(x, params)
    assert jnp.allclose(out, ref_bf16, atol=5e-3, rtol=5e-3), "small-batch mismatch vs bf16 reference"
    assert jnp.allclose(out, ref_f32, atol=5e-2, rtol=5e-2), "small-batch mismatch vs f32 reference"

    # --- multi-tile batch (>= 2 grid steps -> both v7x TensorCores busy) ---
    x2 = jax.random.normal(kx2, (40, input_shape), jnp.float32)
    out2 = jax.block_until_ready(forward(x2))
    assert out2.shape == (40, n_actions)
    ref2_bf16 = fc_dqn_reference_bf16(x2, params)
    ref2_f32 = fc_dqn_reference_f32(x2, params)
    assert jnp.allclose(out2, ref2_bf16, atol=5e-3, rtol=5e-3), "multi-tile mismatch vs bf16 reference"
    assert jnp.allclose(out2, ref2_f32, atol=5e-2, rtol=5e-2), "multi-tile mismatch vs f32 reference"

    print("KERNEL_OK")
</pallas_src>

<mosaic_0001>
module attributes {stable_mosaic.version = 11 : i64} {
  func.func @kernel(%arg0: i32, %arg1: memref<16x32xbf16, #tpu.memory_space<vmem>>, %arg2: memref<288x256xbf16, #tpu.memory_space<vmem>>, %arg3: memref<640x128xbf16, #tpu.memory_space<vmem>>, %arg4: memref<8x256xf32, #tpu.memory_space<vmem>>, %arg5: memref<16x128xbf16, #tpu.memory_space<vmem>>) attributes {dimension_semantics = [#tpu.dimension_semantics<parallel>], iteration_bounds = array<i64: 1>, scalar_prefetch = 0 : i64, scratch_operands = 0 : i64, tpu.core_type = #tpu.core_type<tc>, window_params = [{transform_indices = @transform_0, window_bounds = array<i64: 16, 32>}, {pipeline_mode = #tpu.pipeline_mode<synchronous>, transform_indices = @transform_1, window_bounds = array<i64: 288, 256>}, {pipeline_mode = #tpu.pipeline_mode<synchronous>, transform_indices = @transform_2, window_bounds = array<i64: 640, 128>}, {pipeline_mode = #tpu.pipeline_mode<synchronous>, transform_indices = @transform_3, window_bounds = array<i64: 8, 256>}, {transform_indices = @transform_4, window_bounds = array<i64: 16, 128>}]} {
    %c0 = arith.constant 0 : index
    %c0_0 = arith.constant 0 : index
    %0 = vector.load %arg1[%c0, %c0_0] : memref<16x32xbf16, #tpu.memory_space<vmem>>, vector<16x32xbf16>
    %c0_1 = arith.constant 0 : index
    %c0_2 = arith.constant 0 : index
    %1 = vector.load %arg2[%c0_1, %c0_2] : memref<288x256xbf16, #tpu.memory_space<vmem>>, vector<32x256xbf16>
    %cst = arith.constant dense<0.000000e+00> : vector<16x256xf32>
    %2 = tpu.matmul %0, %1, %cst {dimension_numbers = #tpu.dot_dimension_numbers<[1], [0], [0], [1], [0, 0, 1, 1], [], []>} : vector<16x32xbf16>, vector<32x256xbf16>, vector<16x256xf32> -> vector<16x256xf32>
    %c0_3 = arith.constant 0 : index
    %c0_4 = arith.constant 0 : index
    %3 = vector.load %arg4[%c0_3, %c0_4] : memref<8x256xf32, #tpu.memory_space<vmem>>, vector<1x256xf32>
    %4 = vector.broadcast %3 : vector<1x256xf32> to vector<16x256xf32>
    %5 = arith.addf %2, %4 : vector<16x256xf32>
    %cst_5 = arith.constant 0.000000e+00 : f32
    %6 = vector.broadcast %cst_5 : f32 to vector<16x256xf32>
    %7 = arith.maximumf %5, %6 : vector<16x256xf32>
    %8 = arith.truncf %7 : vector<16x256xf32> to vector<16x256xbf16>
    %c32 = arith.constant 32 : index
    %c0_6 = arith.constant 0 : index
    %9 = vector.load %arg2[%c32, %c0_6] : memref<288x256xbf16, #tpu.memory_space<vmem>>, vector<256x256xbf16>
    %cst_7 = arith.constant dense<0.000000e+00> : vector<16x256xf32>
    %10 = tpu.matmul %8, %9, %cst_7 {dimension_numbers = #tpu.dot_dimension_numbers<[1], [0], [0], [1], [0, 0, 1, 1], [], []>} : vector<16x256xbf16>, vector<256x256xbf16>, vector<16x256xf32> -> vector<16x256xf32>
    %c1 = arith.constant 1 : index
    %c0_8 = arith.constant 0 : index
    %11 = vector.load %arg4[%c1, %c0_8] : memref<8x256xf32, #tpu.memory_space<vmem>>, vector<1x256xf32>
    %12 = vector.broadcast %11 : vector<1x256xf32> to vector<16x256xf32>
    %13 = arith.addf %10, %12 : vector<16x256xf32>
    %cst_9 = arith.constant 0.000000e+00 : f32
    %14 = vector.broadcast %cst_9 : f32 to vector<16x256xf32>
    %15 = arith.maximumf %13, %14 : vector<16x256xf32>
    %16 = arith.truncf %15 : vector<16x256xf32> to vector<16x256xbf16>
    %c0_10 = arith.constant 0 : index
    %c0_11 = arith.constant 0 : index
    %17 = vector.load %arg3[%c0_10, %c0_11] : memref<640x128xbf16, #tpu.memory_space<vmem>>, vector<256x128xbf16>
    %cst_12 = arith.constant dense<0.000000e+00> : vector<16x128xf32>
    %18 = tpu.matmul %16, %17, %cst_12 {dimension_numbers = #tpu.dot_dimension_numbers<[1], [0], [0], [1], [0, 0, 1, 1], [], []>} : vector<16x256xbf16>, vector<256x128xbf16>, vector<16x128xf32> -> vector<16x128xf32>
    %c2 = arith.constant 2 : index
    %c0_13 = arith.constant 0 : index
    %19 = vector.load %arg4[%c2, %c0_13] : memref<8x256xf32, #tpu.memory_space<vmem>>, vector<1x128xf32>
    %20 = vector.broadcast %19 : vector<1x128xf32> to vector<16x128xf32>
    %21 = arith.addf %18, %20 : vector<16x128xf32>
    %cst_14 = arith.constant 0.000000e+00 : f32
    %22 = vector.broadcast %cst_14 : f32 to vector<16x128xf32>
    %23 = arith.maximumf %21, %22 : vector<16x128xf32>
    %24 = arith.truncf %23 : vector<16x128xf32> to vector<16x128xbf16>
    %c256 = arith.constant 256 : index
    %c0_15 = arith.constant 0 : index
    %25 = vector.load %arg3[%c256, %c0_15] : memref<640x128xbf16, #tpu.memory_space<vmem>>, vector<128x128xbf16>
    %cst_16 = arith.constant dense<0.000000e+00> : vector<16x128xf32>
    %26 = tpu.matmul %24, %25, %cst_16 {dimension_numbers = #tpu.dot_dimension_numbers<[1], [0], [0], [1], [0, 0, 1, 1], [], []>} : vector<16x128xbf16>, vector<128x128xbf16>, vector<16x128xf32> -> vector<16x128xf32>
    %c3 = arith.constant 3 : index
    %c0_17 = arith.constant 0 : index
    %27 = vector.load %arg4[%c3, %c0_17] : memref<8x256xf32, #tpu.memory_space<vmem>>, vector<1x128xf32>
    %28 = vector.broadcast %27 : vector<1x128xf32> to vector<16x128xf32>
    %29 = arith.addf %26, %28 : vector<16x128xf32>
    %cst_18 = arith.constant 0.000000e+00 : f32
    %30 = vector.broadcast %cst_18 : f32 to vector<16x128xf32>
    %31 = arith.maximumf %29, %30 : vector<16x128xf32>
    %32 = arith.truncf %31 : vector<16x128xf32> to vector<16x128xbf16>
    %c384 = arith.constant 384 : index
    %c0_19 = arith.constant 0 : index
    %33 = vector.load %arg3[%c384, %c0_19] : memref<640x128xbf16, #tpu.memory_space<vmem>>, vector<128x128xbf16>
    %cst_20 = arith.constant dense<0.000000e+00> : vector<16x128xf32>
    %34 = tpu.matmul %32, %33, %cst_20 {dimension_numbers = #tpu.dot_dimension_numbers<[1], [0], [0], [1], [0, 0, 1, 1], [], []>} : vector<16x128xbf16>, vector<128x128xbf16>, vector<16x128xf32> -> vector<16x128xf32>
    %c4 = arith.constant 4 : index
    %c0_21 = arith.constant 0 : index
    %35 = vector.load %arg4[%c4, %c0_21] : memref<8x256xf32, #tpu.memory_space<vmem>>, vector<1x128xf32>
    %36 = vector.broadcast %35 : vector<1x128xf32> to vector<16x128xf32>
    %37 = arith.addf %34, %36 : vector<16x128xf32>
    %cst_22 = arith.constant 0.000000e+00 : f32
    %38 = vector.broadcast %cst_22 : f32 to vector<16x128xf32>
    %39 = arith.maximumf %37, %38 : vector<16x128xf32>
    %40 = arith.truncf %39 : vector<16x128xf32> to vector<16x128xbf16>
    %c512 = arith.constant 512 : index
    %c0_23 = arith.constant 0 : index
    %41 = vector.load %arg3[%c512, %c0_23] : memref<640x128xbf16, #tpu.memory_space<vmem>>, vector<128x128xbf16>
    %cst_24 = arith.constant dense<0.000000e+00> : vector<16x128xf32>
    %42 = tpu.matmul %40, %41, %cst_24 {dimension_numbers = #tpu.dot_dimension_numbers<[1], [0], [0], [1], [0, 0, 1, 1], [], []>} : vector<16x128xbf16>, vector<128x128xbf16>, vector<16x128xf32> -> vector<16x128xf32>
    %c5 = arith.constant 5 : index
    %c0_25 = arith.constant 0 : index
    %43 = vector.load %arg4[%c5, %c0_25] : memref<8x256xf32, #tpu.memory_space<vmem>>, vector<1x128xf32>
    %44 = vector.broadcast %43 : vector<1x128xf32> to vector<16x128xf32>
    %45 = arith.addf %42, %44 : vector<16x128xf32>
    %46 = arith.truncf %45 : vector<16x128xf32> to vector<16x128xbf16>
    %c0_26 = arith.constant 0 : index
    %c0_27 = arith.constant 0 : index
    %47 = vector.load %arg5[%c0_26, %c0_27] : memref<16x128xbf16, #tpu.memory_space<vmem>>, vector<16x128xbf16>
    tpu.vector_store %arg5[%c0_26, %c0_27], %46 {strides = array<i32>} : memref<16x128xbf16, #tpu.memory_space<vmem>>, vector<16x128xbf16>,
    return
  }
  func.func @transform_0(%arg0: i32) -> (i32, i32) {
    %c0_i32 = arith.constant 0 : i32
    %c0_i32_0 = arith.constant 0 : i32
    return %arg0, %c0_i32 : i32, i32
  }
  func.func @transform_1(%arg0: i32) -> (i32, i32) {
    %c0_i32 = arith.constant 0 : i32
    %c0_i32_0 = arith.constant 0 : i32
    %c0_i32_1 = arith.constant 0 : i32
    return %c0_i32, %c0_i32_0 : i32, i32
  }
  func.func @transform_2(%arg0: i32) -> (i32, i32) {
    %c0_i32 = arith.constant 0 : i32
    %c0_i32_0 = arith.constant 0 : i32
    %c0_i32_1 = arith.constant 0 : i32
    return %c0_i32, %c0_i32_0 : i32, i32
  }
  func.func @transform_3(%arg0: i32) -> (i32, i32) {
    %c0_i32 = arith.constant 0 : i32
    %c0_i32_0 = arith.constant 0 : i32
    %c0_i32_1 = arith.constant 0 : i32
    return %c0_i32, %c0_i32_0 : i32, i32
  }
  func.func @transform_4(%arg0: i32) -> (i32, i32) {
    %c0_i32 = arith.constant 0 : i32
    %c0_i32_0 = arith.constant 0 : i32
    return %arg0, %c0_i32 : i32, i32
  }
}

</mosaic_0001>

<bundles_post_ra>
// kernel: _forward.1
= control target key start
LH: loop header
LB: loop body
LE: loop exit
PB: predicated region body
PF: predicated region fallthrough
CT: control target
= control target key end

     0   :  { %9 = vsyncpa [#allocation3], 0  ;;  %s1313_s0 = inlined_call_operand.vmem [shape: bf16[16,32], index: 0, kind: input, shape index: {}]   ;;  %s1314_s1 = inlined_call_operand.hbm [shape: bf16[288,256], index: 1, kind: input, shape index: {}]   ;;  %s1315_s2 = inlined_call_operand.hbm [shape: bf16[640,128], index: 2, kind: input, shape index: {}]   ;;  %s1316_s3 = inlined_call_operand.vmem [shape: f32[8,256], index: 3, kind: input, shape index: {}]   ;;  %s1317_s4 = inlined_call_operand.vmem [shape: bf16[16,128], index: 4, kind: output, shape index: {}]  }
   0x1   :  { %s17_s17 = sshll.u32 %s1314_s1, 4  ;;  %s18_s17 = int_to_ptr.hbm [resolvable:$true] %s17_s17 }
   0x2   :  { %10 = vsyncpa [#allocation5], 0  ;;  %s1250_s18 = smov [#allocation2]   ;;  %s30_s22 = sshll.u32 %s1315_s2, 4  ;;  %s31_s22 = int_to_ptr.hbm [resolvable:$true] %s30_s22 }
   0x3   :  { %s19_s19 = sshll.u32 %s1250_s18, 4  ;;  %s1251_s23 = smov 128   ;;  %s20_s19 = int_to_ptr.vmem [resolvable:$true] %s19_s19 }
   0x4   :  { %s1252_s24 = smov 8   ;;  %s1253_s25 = smov [#allocation4]  }
   0x5   :  { %25 = dma.hbm_to_vmem [thread:$0]  %s18_s17, 4608, %s20_s19, [#allocation3], %s1251_s23, %s1251_s23, %s1252_s24  }
   0x6   :  { %s32_s26 = sshll.u32 %s1253_s25, 4  ;;  %s1254_s27 = smov 64   ;;  %s33_s26 = int_to_ptr.vmem [resolvable:$true] %s32_s26 }
   0x7   :  { %s1255_s28 = smov 4  }
   0x8   :  { %38 = dma.hbm_to_vmem [thread:$0]  %s31_s22, 5120, %s33_s26, [#allocation5], %s1254_s27, %s1254_s27, %s1255_s28  }
   0x9   :  { %1246 = dma.done.wait [#allocation3], 4608  }
   0xa   :  { %1247 = vsyncadd [#allocation3], 4294962688 }
   0xb   :  { %1248 = dma.done.wait [#allocation5], 5120  }
   0xc   :  { %1249 = vsyncadd [#allocation5], 4294962176  ;;  %v813_v0 = vld [vmem:[#allocation2 + $0x10] sm:$0xf]  ;;  %v1114_v1 = vld [vmem:[#allocation2 + $0x14] sm:$0xf0] }
   0xd   :  { %v1113_v2 = vld [vmem:[#allocation2 + $0x14] sm:$0xf]  ;;  %v814_v3 = vor.u32 %v1114_v1, %v813_v0  ;;  %v815_v4 = vld [vmem:[#allocation2 + $0x18] sm:$0xf0]  ;;  %v805_v5 = vld [vmem:[#allocation2] sm:$0xf] }
   0xe   :  { %v1112_v6 = vld [vmem:[#allocation2 + $0x4] sm:$0xf0]  ;;  %v818_v7 = vor.u32 %v1113_v2, %v815_v4  ;;  %v1111_v8 = vld [vmem:[#allocation2 + $0x4] sm:$0xf]  ;;  %v807_v9 = vld [vmem:[#allocation2 + $0x8] sm:$0xf0] }
   0xf   :  { %vm87_vm0 = vcmask 261120   ;;  %97 = vmatpush.bf16.msra.mxu0 %v814_v3  ;;  %v806_v10 = vor.u32 %v1112_v6, %v805_v5  ;;  %v880_v11 = vld [vmem:[#allocation2 + $0x90] sm:$0xf]  ;;  %v1130_v12 = vld [vmem:[#allocation2 + $0x94] sm:$0xf0]  ;;  %v810_v14 = vor.u32 %v1111_v8, %v807_v9  ;;  %v1110_v15 = vld [vmem:[%s1313_s0] sm:$0xff] }
  0x10   :  { %v944_v13 = vld [vmem:[#allocation2 + $0x110] sm:$0xf]  ;;  %111 = vmatpush.bf16.msra.mxu1 %v818_v7  ;;  %v881_v16 = vor.u32 %v1130_v12, %v880_v11  ;;  %v1146_v17 = vld [vmem:[#allocation2 + $0x114] sm:$0xf0]  ;;  %v1129_v18 = vld [vmem:[#allocation2 + $0x94] sm:$0xf] }
  0x11   :  { %v882_v19 = vld [vmem:[#allocation2 + $0x98] sm:$0xf0]  ;;  %v945_v20 = vor.u32 %v1146_v17, %v944_v13  ;;  %v1145_v22 = vld [vmem:[#allocation2 + $0x114] sm:$0xf]  ;;  %v872_v24 = vld [vmem:[#allocation2 + $0x80] sm:$0xf] }
  0x12   :  { %v885_v21 = vor.u32 %v1129_v18, %v882_v19  ;;  %v946_v23 = vld [vmem:[#allocation2 + $0x118] sm:$0xf0]  ;;  %324 = vmatpush.bf16.msra.mxu2 %v881_v16  ;;  %v1128_v26 = vld [vmem:[#allocation2 + $0x84] sm:$0xf0]  ;;  %v936_v27 = vld [vmem:[#allocation2 + $0x100] sm:$0xf] }
  0x13   :  { %v949_v25 = vor.u32 %v1145_v22, %v946_v23  ;;  %v1144_v28 = vld [vmem:[#allocation2 + $0x104] sm:$0xf0]  ;;  %98 = vmatpush.bf16.msra.mxu0 %v806_v10  ;;  %338 = vmatpush.bf16.msra.mxu3 %v945_v20  ;;  %v873_v29 = vor.u32 %v1128_v26, %v872_v24  ;;  %v1127_v31 = vld [vmem:[#allocation2 + $0x84] sm:$0xf]  ;;  %v874_v32 = vld [vmem:[#allocation2 + $0x88] sm:$0xf0] }
  0x14   :  { %v937_v30 = vor.u32 %v1144_v28, %v936_v27  ;;  %v1143_v33 = vld [vmem:[#allocation2 + $0x104] sm:$0xf]  ;;  %112 = vmatpush.bf16.msra.mxu1 %v810_v14  ;;  %v877_v34 = vor.u32 %v1127_v31, %v874_v32  ;;  %v938_v35 = vld [vmem:[#allocation2 + $0x108] sm:$0xf0]  ;;  %v864_v36 = vld [vmem:[#allocation2 + $0x70] sm:$0xf] }
  0x15   :  { %v1126_v37 = vld [vmem:[#allocation2 + $0x74] sm:$0xf0]  ;;  %v941_v38 = vor.u32 %v1143_v33, %v938_v35  ;;  %v928_v39 = vld [vmem:[#allocation2 + $0xf0] sm:$0xf]  ;;  %v1125_v41 = vld [vmem:[#allocation2 + $0x74] sm:$0xf] }
  0x16   :  { %v1142_v40 = vld [vmem:[#allocation2 + $0xf4] sm:$0xf0]  ;;  %819 = vmatmul.msk.bf16.vlgmr.msra.gmra.mxu0 %vm87_vm0, %v1110_v15  ;;  %325 = vmatpush.bf16.msra.mxu2 %v873_v29  ;;  %v865_v42 = vor.u32 %v1126_v37, %v864_v36  ;;  %v866_v43 = vld [vmem:[#allocation2 + $0x78] sm:$0xf0]  ;;  %v1141_v44 = vld [vmem:[#allocation2 + $0xf4] sm:$0xf] }
  0x17   :  { %352 = vmatpush.bf16.msrb.mxu0 %v885_v21  ;;  %v930_v45 = vld [vmem:[#allocation2 + $0xf8] sm:$0xf0]  ;;  %820 = vmatmul.msk.bf16.vlgmr.msra.gmra.mxu1 %vm87_vm0, %v1110_v15  ;;  %v929_v46 = vor.u32 %v1142_v40, %v928_v39  ;;  %v856_v47 = vld [vmem:[#allocation2 + $0x60] sm:$0xf]  ;;  %v1124_v48 = vld [vmem:[#allocation2 + $0x64] sm:$0xf0]  ;;  %v869_v49 = vor.u32 %v1125_v41, %v866_v43 }
  0x18   :  { %366 = vmatpush.bf16.msrb.mxu1 %v949_v25  ;;  %339 = vmatpush.bf16.msra.mxu3 %v937_v30  ;;  %v920_v50 = vld [vmem:[#allocation2 + $0xe0] sm:$0xf]  ;;  %v1140_v51 = vld [vmem:[#allocation2 + $0xe4] sm:$0xf0]  ;;  %v933_v52 = vor.u32 %v1141_v44, %v930_v45  ;;  %v1123_v53 = vld [vmem:[#allocation2 + $0x64] sm:$0xf]  ;;  %v857_v55 = vor.u32 %v1124_v48, %v856_v47 }
  0x19   :  { %v858_v54 = vld [vmem:[#allocation2 + $0x68] sm:$0xf0]  ;;  %v1139_v56 = vld [vmem:[#allocation2 + $0xe4] sm:$0xf]  ;;  %v921_v58 = vor.u32 %v1140_v51, %v920_v50  ;;  %v848_v61 = vld [vmem:[#allocation2 + $0x50] sm:$0xf] }
  0x1a   :  { %326 = vmatpush.bf16.msra.mxu2 %v865_v42  ;;  %v922_v57 = vld [vmem:[#allocation2 + $0xe8] sm:$0xf0]  ;;  %v861_v59 = vor.u32 %v1123_v53, %v858_v54  ;;  %v1122_v62 = vld [vmem:[#allocation2 + $0x54] sm:$0xf0]  ;;  %v912_v63 = vld [vmem:[#allocation2 + $0xd0] sm:$0xf] }
  0x1b   :  { %353 = vmatpush.bf16.msrb.mxu0 %v877_v34  ;;  %v925_v60 = vor.u32 %v1139_v56, %v922_v57  ;;  %v849_v0 = vor.u32 %v1122_v62, %v848_v61  ;;  %v1138_v1 = vld [vmem:[#allocation2 + $0xd4] sm:$0xf0]  ;;  %v1121_v2 = vld [vmem:[#allocation2 + $0x54] sm:$0xf]  ;;  %v850_v3 = vld [vmem:[#allocation2 + $0x58] sm:$0xf0] }
  0x1c   :  { %367 = vmatpush.bf16.msrb.mxu1 %v941_v38  ;;  %340 = vmatpush.bf16.msra.mxu3 %v929_v46  ;;  %v913_v4 = vor.u32 %v1138_v1, %v912_v63  ;;  %v853_v5 = vor.u32 %v1121_v2, %v850_v3  ;;  %v1137_v6 = vld [vmem:[#allocation2 + $0xd4] sm:$0xf]  ;;  %v914_v7 = vld [vmem:[#allocation2 + $0xd8] sm:$0xf0]  ;;  %v840_v9 = vld [vmem:[#allocation2 + $0x40] sm:$0xf] }
  0x1d   :  { %v917_v8 = vor.u32 %v1137_v6, %v914_v7  ;;  %v1120_v10 = vld [vmem:[#allocation2 + $0x44] sm:$0xf0]  ;;  %v904_v12 = vld [vmem:[#allocation2 + $0xc0] sm:$0xf]  ;;  %v1119_v14 = vld [vmem:[#allocation2 + $0x44] sm:$0xf] }
  0x1e   :  { %327 = vmatpush.bf16.msra.mxu2 %v857_v55  ;;  %v841_v11 = vor.u32 %v1120_v10, %v840_v9  ;;  %v1136_v13 = vld [vmem:[#allocation2 + $0xc4] sm:$0xf0]  ;;  %v842_v16 = vld [vmem:[#allocation2 + $0x48] sm:$0xf0]  ;;  %v1135_v17 = vld [vmem:[#allocation2 + $0xc4] sm:$0xf] }
  0x1f   :  { %354 = vmatpush.bf16.msrb.mxu0 %v869_v49  ;;  %v905_v15 = vor.u32 %v1136_v13, %v904_v12  ;;  %v906_v18 = vld [vmem:[#allocation2 + $0xc8] sm:$0xf0]  ;;  %v845_v19 = vor.u32 %v1119_v14, %v842_v16  ;;  %v832_v21 = vld [vmem:[#allocation2 + $0x30] sm:$0xf]  ;;  %v1118_v22 = vld [vmem:[#allocation2 + $0x34] sm:$0xf0] }
  0x20   :  { %368 = vmatpush.bf16.msrb.mxu1 %v933_v52  ;;  %341 = vmatpush.bf16.msra.mxu3 %v921_v58  ;;  %v909_v20 = vor.u32 %v1135_v17, %v906_v18  ;;  %v896_v23 = vld [vmem:[#allocation2 + $0xb0] sm:$0xf]  ;;  %v833_v24 = vor.u32 %v1118_v22, %v832_v21  ;;  %v1134_v25 = vld [vmem:[#allocation2 + $0xb4] sm:$0xf0]  ;;  %v1117_v26 = vld [vmem:[#allocation2 + $0x34] sm:$0xf] }
  0x21   :  { %v834_v27 = vld [vmem:[#allocation2 + $0x38] sm:$0xf0]  ;;  %v897_v28 = vor.u32 %v1134_v25, %v896_v23  ;;  %v1133_v30 = vld [vmem:[#allocation2 + $0xb4] sm:$0xf]  ;;  %v824_v33 = vld [vmem:[#allocation2 + $0x20] sm:$0xf] }
  0x22   :  { %328 = vmatpush.bf16.msra.mxu2 %v849_v0  ;;  %v837_v29 = vor.u32 %v1117_v26, %v834_v27  ;;  %v898_v31 = vld [vmem:[#allocation2 + $0xb8] sm:$0xf0]  ;;  %v1116_v34 = vld [vmem:[#allocation2 + $0x24] sm:$0xf0]  ;;  %v888_v35 = vld [vmem:[#allocation2 + $0xa0] sm:$0xf] }
  0x23   :  { %355 = vmatpush.bf16.msrb.mxu0 %v861_v59  ;;  %v901_v32 = vor.u32 %v1133_v30, %v898_v31  ;;  %v825_v36 = vor.u32 %v1116_v34, %v824_v33  ;;  %v1132_v37 = vld [vmem:[#allocation2 + $0xa4] sm:$0xf0]  ;;  %v1115_v38 = vld [vmem:[#allocation2 + $0x24] sm:$0xf]  ;;  %v826_v39 = vld [vmem:[#allocation2 + $0x28] sm:$0xf0] }
  0x24   :  { %369 = vmatpush.bf16.msrb.mxu1 %v925_v60  ;;  %342 = vmatpush.bf16.msra.mxu3 %v913_v4  ;;  %v889_v40 = vor.u32 %v1132_v37, %v888_v35  ;;  %v829_v41 = vor.u32 %v1115_v38, %v826_v39  ;;  %v1131_v42 = vld [vmem:[#allocation2 + $0xa4] sm:$0xf]  ;;  %v890_v43 = vld [vmem:[#allocation2 + $0xa8] sm:$0xf0]  ;;  %v1162_v45 = vld [vmem:[#allocation4 + $0x78] sm:$0xff] }
  0x25   :  { %v893_v44 = vor.u32 %v1131_v42, %v890_v43  ;;  %v1154_v46 = vld [vmem:[#allocation4 + $0x38] sm:$0xff]  ;;  %v1161_v47 = vld [vmem:[#allocation4 + $0x70] sm:$0xff]  ;;  %v1160_v49 = vld [vmem:[#allocation4 + $0x68] sm:$0xff] }
  0x26   :  { %329 = vmatpush.bf16.msra.mxu2 %v841_v11  ;;  %v1153_v48 = vld [vmem:[#allocation4 + $0x30] sm:$0xff]  ;;  %v1159_v50 = vld [vmem:[#allocation4 + $0x60] sm:$0xff]  ;;  %v1152_v4 = vld [vmem:[#allocation4 + $0x28] sm:$0xff] }
  0x27   :  { %356 = vmatpush.bf16.msrb.mxu0 %v853_v5  ;;  %v56_v51 = vld [vmem:[%s1316_s3] ss:$8 sm:$0x3]  ;;  %v1158_v5 = vld [vmem:[#allocation4 + $0x58] sm:$0xff]  ;;  %v1157_v7 = vld [vmem:[#allocation4 + $0x50] sm:$0xff] }
  0x28   :  { %370 = vmatpush.bf16.msrb.mxu1 %v917_v8  ;;  %343 = vmatpush.bf16.msra.mxu3 %v905_v15  ;;  %v58_v54 = vperm.slane %v56_v51, 0  ;;  %v59_v55 = vperm.slane %v56_v51, 1  ;;  %v1151_v6 = vld [vmem:[#allocation4 + $0x20] sm:$0xff]  ;;  %v1150_v8 = vld [vmem:[#allocation4 + $0x18] sm:$0xff]  ;;  %v1156_v9 = vld [vmem:[#allocation4 + $0x48] sm:$0xff] }
  0x29   :  { %v1149_v10 = vld [vmem:[#allocation4 + $0x10] sm:$0xff]  ;;  %v1155_v11 = vld [vmem:[#allocation4 + $0x40] sm:$0xff]  ;;  %v1148_v12 = vld [vmem:[#allocation4 + $0x8] sm:$0xff] }
  0x2a   :  { %330 = vmatpush.bf16.msra.mxu2 %v833_v24  ;;  %v1147_v13 = vld [vmem:[#allocation4] sm:$0xff]  ;;  %v1170_v14 = vld [vmem:[#allocation4 + $0xb8] sm:$0xff]  ;;  %v1169_v15 = vld [vmem:[#allocation4 + $0xb0] sm:$0xff] }
  0x2b   :  { %357 = vmatpush.bf16.msrb.mxu0 %v845_v19  ;;  %v821_v16 = vld [vmem:[%s1316_s3 + $0x1] ss:$8 sm:$0x3]  ;;  %v1166_v43 = vld [vmem:[#allocation4 + $0x98] sm:$0xff] }
  0x2c   :  { %371 = vmatpush.bf16.msrb.mxu1 %v909_v20  ;;  %344 = vmatpush.bf16.msra.mxu3 %v897_v28  ;;  %v161_v18 = vperm.slane %v821_v16, 1  ;;  %v160_v22 = vperm.slane %v821_v16, 0  ;;  %v1167_v42 = vld [vmem:[#allocation4 + $0xa0] sm:$0xff]  ;;  %v1181_v16 = vld [vmem:[#allocation4 + $0x110] sm:$0xff] }
  0x2e   :  { %331 = vmatpush.bf16.msra.mxu2 %v825_v36 }
  0x2f   :  { %358 = vmatpush.bf16.msrb.mxu0 %v837_v29 }
  0x30   :  { %372 = vmatpush.bf16.msrb.mxu1 %v901_v32  ;;  %345 = vmatpush.bf16.msra.mxu3 %v889_v40 }
  0x32   :  { %515 = vmatpush.bf16.msrb.mxu2 %v1154_v46  ;;  %v1163_v46 = vld [vmem:[#allocation4 + $0x80] sm:$0xff] }
  0x33   :  { %359 = vmatpush.bf16.msrb.mxu0 %v829_v41  ;;  %v1168_v41 = vld [vmem:[#allocation4 + $0xa8] sm:$0xff] }
  0x34   :  { %373 = vmatpush.bf16.msrb.mxu1 %v893_v44  ;;  %529 = vmatpush.bf16.msrb.mxu3 %v1162_v45  ;;  %v1165_v44 = vld [vmem:[#allocation4 + $0x90] sm:$0xff]  ;;  %v1164_v45 = vld [vmem:[#allocation4 + $0x88] sm:$0xff] }
  0x36   :  { %516 = vmatpush.bf16.msrb.mxu2 %v1153_v48  ;;  %v1177_v48 = vld [vmem:[#allocation4 + $0xf0] sm:$0xff] }
  0x37   :  { %611 = vmatpush.bf16.msra.mxu0 %v1170_v14 }
  0x38   :  { %530 = vmatpush.bf16.msrb.mxu3 %v1161_v47  ;;  %v1178_v47 = vld [vmem:[#allocation4 + $0xf8] sm:$0xff] }
  0x39   :  { %693 = vmatpush.bf16.msra.mxu1 %v1178_v47 }
  0x3a   :  { %517 = vmatpush.bf16.msrb.mxu2 %v1152_v4  ;;  %v1185_v4 = vld [vmem:[#allocation4 + $0x130] sm:$0xff] }
  0x3b   :  { %612 = vmatpush.bf16.msra.mxu0 %v1169_v15  ;;  %v1182_v15 = vld [vmem:[#allocation4 + $0x118] sm:$0xff] }
  0x3c   :  { %531 = vmatpush.bf16.msrb.mxu3 %v1160_v49  ;;  %v1176_v49 = vld [vmem:[#allocation4 + $0xe8] sm:$0xff] }
  0x3d   :  { %694 = vmatpush.bf16.msra.mxu1 %v1177_v48 }
  0x3e   :  { %518 = vmatpush.bf16.msrb.mxu2 %v1151_v6  ;;  %v1183_v6 = vld [vmem:[#allocation4 + $0x120] sm:$0xff] }
  0x3f   :  { %613 = vmatpush.bf16.msra.mxu0 %v1168_v41 }
  0x40   :  { %532 = vmatpush.bf16.msrb.mxu3 %v1159_v50  ;;  %v1175_v50 = vld [vmem:[#allocation4 + $0xe0] sm:$0xff] }
  0x41   :  { %695 = vmatpush.bf16.msra.mxu1 %v1176_v49 }
  0x42   :  { %519 = vmatpush.bf16.msrb.mxu2 %v1150_v8  ;;  %v562_v8 = vld [vmem:[%s1316_s3 + $0x3] ss:$0 sm:$0xff] }
  0x43   :  { %614 = vmatpush.bf16.msra.mxu0 %v1167_v42 }
  0x44   :  { %533 = vmatpush.bf16.msrb.mxu3 %v1158_v5  ;;  %v1184_v5 = vld [vmem:[#allocation4 + $0x128] sm:$0xff] }
  0x45   :  { %696 = vmatpush.bf16.msra.mxu1 %v1175_v50 }
  0x46   :  { %520 = vmatpush.bf16.msrb.mxu2 %v1149_v10 }
  0x47   :  { %615 = vmatpush.bf16.msra.mxu0 %v1166_v43 }
  0x48   :  { %534 = vmatpush.bf16.msrb.mxu3 %v1157_v7 }
  0x4a   :  { %521 = vmatpush.bf16.msrb.mxu2 %v1148_v12 }
  0x4b   :  { %616 = vmatpush.bf16.msra.mxu0 %v1165_v44 }
  0x4c   :  { %535 = vmatpush.bf16.msrb.mxu3 %v1156_v9 }
  0x4e   :  { %522 = vmatpush.bf16.msrb.mxu2 %v1147_v13 }
  0x4f   :  { %617 = vmatpush.bf16.msra.mxu0 %v1164_v45 }
  0x50   :  { %536 = vmatpush.bf16.msrb.mxu3 %v1155_v11 }
  0x53   :  { %618 = vmatpush.bf16.msra.mxu0 %v1163_v46 }
  0x93   :  { %v100_v52 = vpop.f32.mrf.mxu0 }
  0x94   :  { %v114_v53 = vpop.f32.mrf.mxu1  ;;  %v101_v56 = vadd.f32 %v100_v52, %v58_v54 }
  0x95   :  { %v115_v57 = vadd.f32 %v114_v53, %v59_v55  ;;  %v418_v53 = vld [vmem:[%s1316_s3 + $0x2] ss:$0 sm:$0xff] }
  0x96   :  { %v119_v62 = vmax.f32 %v101_v56, 0.0 }
  0x97   :  { %v120_v0 = vmax.f32 %v115_v57, 0.0 }
  0x9b   :  { %v102_v58 = vpop.f32.mrf.mxu0 }
  0x9c   :  { %v103_v59 = vadd.f32 %v102_v58, %v58_v54  ;;  %v116_v60 = vpop.f32.mrf.mxu1 }
  0x9d   :  { %v117_v61 = vadd.f32 %v116_v60, %v59_v55 }
  0x9e   :  { %v121_v63 = vmax.f32 %v103_v59, 0.0 }
  0x9f   :  { %v122_v1 = vmax.f32 %v117_v61, 0.0 }
  0xa0   :  { %v123_v2 = vpack.c.bf16 %v121_v63, %v119_v62  ;;  %v1174_v63 = vld [vmem:[#allocation4 + $0xd8] sm:$0xff] }
  0xa1   :  { %v124_v3 = vpack.c.bf16 %v122_v1, %v120_v0  ;;  %697 = vmatpush.bf16.msra.mxu1 %v1174_v63  ;;  %v1173_v0 = vld [vmem:[#allocation4 + $0xd0] sm:$0xff]  ;;  %v1172_v1 = vld [vmem:[#allocation4 + $0xc8] sm:$0xff] }
  0xa2   :  { %332 = vmatmul.bf16.vlgmr.msra.gmra.mxu2 %v123_v2  ;;  %360 = vmatmul.bf16.vlgmr.msrb.gmra.mxu0 %v123_v2  ;;  %v1171_v2 = vld [vmem:[#allocation4 + $0xc0] sm:$0xff] }
  0xa3   :  { %346 = vmatmul.bf16.vlgmr.msra.gmra.mxu3 %v124_v3  ;;  %374 = vmatmul.bf16.vlgmr.msrb.gmra.mxu1 %v124_v3  ;;  %v1186_v3 = vld [vmem:[#allocation4 + $0x138] sm:$0xff] }
  0xa4   :  { %775 = vmatpush.bf16.msra.mxu2 %v1186_v3 }
  0xa5   :  { %698 = vmatpush.bf16.msra.mxu1 %v1173_v0 }
  0xa8   :  { %776 = vmatpush.bf16.msra.mxu2 %v1185_v4 }
  0xa9   :  { %699 = vmatpush.bf16.msra.mxu1 %v1172_v1 }
  0xac   :  { %777 = vmatpush.bf16.msra.mxu2 %v1184_v5 }
  0xad   :  { %700 = vmatpush.bf16.msra.mxu1 %v1171_v2 }
  0xb0   :  { %778 = vmatpush.bf16.msra.mxu2 %v1183_v6 }
  0xb4   :  { %779 = vmatpush.bf16.msra.mxu2 %v1182_v15 }
  0xb8   :  { %780 = vmatpush.bf16.msra.mxu2 %v1181_v16 }
 0x11f   :  { %v361_v17 = vpop.f32.mrf.mxu0 }
 0x120   :  { %v375_v19 = vpop.f32.mrf.mxu1  ;;  %v362_v20 = vadd.f32 %v361_v17, %v161_v18  ;;  %v1180_v17 = vld [vmem:[#allocation4 + $0x108] sm:$0xff] }
 0x121   :  { %781 = vmatpush.bf16.msra.mxu2 %v1180_v17 }
 0x122   :  { %v376_v25 = vadd.f32 %v375_v19, %v362_v20  ;;  %v644_v20 = vld [vmem:[%s1316_s3 + $0x4] ss:$0 sm:$0xff] }
 0x124   :  { %v381_v30 = vmax.f32 %v376_v25, 0.0 }
 0x125   :  { %v333_v21 = vpop.f32.mrf.mxu2 }
 0x126   :  { %v347_v23 = vpop.f32.mrf.mxu3  ;;  %v334_v28 = vadd.f32 %v333_v21, %v160_v22 }
 0x127   :  { %v363_v24 = vpop.f32.mrf.mxu0 }
 0x128   :  { %v364_v26 = vadd.f32 %v363_v24, %v161_v18  ;;  %v377_v27 = vpop.f32.mrf.mxu1  ;;  %v348_v33 = vadd.f32 %v347_v23, %v334_v28  ;;  %v1179_v18 = vld [vmem:[#allocation4 + $0x100] sm:$0xff] }
 0x129   :  { %782 = vmatpush.bf16.msra.mxu2 %v1179_v18  ;;  %v726_v28 = vld [vmem:[%s1316_s3 + $0x5] ss:$0 sm:$0xff] }
 0x12a   :  { %v378_v29 = vadd.f32 %v377_v27, %v364_v26  ;;  %v380_v38 = vmax.f32 %v348_v33, 0.0 }
 0x12c   :  { %v383_v31 = vmax.f32 %v378_v29, 0.0 }
 0x12d   :  { %v335_v32 = vpop.f32.mrf.mxu2 }
 0x12e   :  { %v385_v34 = vpack.c.bf16 %v383_v31, %v381_v30  ;;  %v336_v35 = vadd.f32 %v335_v32, %v160_v22  ;;  %v349_v36 = vpop.f32.mrf.mxu3 }
 0x130   :  { %v350_v37 = vadd.f32 %v349_v36, %v336_v35  ;;  %537 = vmatmul.bf16.vlgmr.msrb.gmra.mxu3 %v385_v34 }
 0x132   :  { %v382_v39 = vmax.f32 %v350_v37, 0.0 }
 0x134   :  { %v384_v40 = vpack.c.bf16 %v382_v39, %v380_v38 }
 0x136   :  { %523 = vmatmul.bf16.vlgmr.msrb.gmra.mxu2 %v384_v40 }
 0x1b3   :  { %v538_v51 = vpop.f32.mrf.mxu3 }
 0x1b9   :  { %v524_v52 = vpop.f32.mrf.mxu2 }
 0x1ba   :  { %v525_v54 = vadd.f32 %v524_v52, %v418_v53 }
 0x1bb   :  { %v540_v58 = vpop.f32.mrf.mxu3 }
 0x1bc   :  { %v539_v56 = vadd.f32 %v538_v51, %v525_v54 }
 0x1be   :  { %v543_v60 = vmax.f32 %v539_v56, 0.0 }
 0x1c1   :  { %v526_v55 = vpop.f32.mrf.mxu2 }
 0x1c2   :  { %v527_v57 = vadd.f32 %v526_v55, %v418_v53 }
 0x1c4   :  { %v541_v59 = vadd.f32 %v540_v58, %v527_v57 }
 0x1c6   :  { %v544_v61 = vmax.f32 %v541_v59, 0.0 }
 0x1c8   :  { %v545_v62 = vpack.c.bf16 %v544_v61, %v543_v60 }
 0x1ca   :  { %619 = vmatmul.bf16.vlgmr.msra.gmra.mxu0 %v545_v62 }
 0x247   :  { %v620_v7 = vpop.f32.mrf.mxu0 }
 0x248   :  { %v621_v9 = vadd.f32 %v620_v7, %v562_v8 }
 0x24a   :  { %v625_v12 = vmax.f32 %v621_v9, 0.0 }
 0x24f   :  { %v622_v10 = vpop.f32.mrf.mxu0 }
 0x250   :  { %v623_v11 = vadd.f32 %v622_v10, %v562_v8 }
 0x252   :  { %v626_v13 = vmax.f32 %v623_v11, 0.0 }
 0x254   :  { %v627_v14 = vpack.c.bf16 %v626_v13, %v625_v12 }
 0x256   :  { %701 = vmatmul.bf16.vlgmr.msra.gmra.mxu1 %v627_v14 }
 0x2d3   :  { %v702_v19 = vpop.f32.mrf.mxu1 }
 0x2d4   :  { %v703_v21 = vadd.f32 %v702_v19, %v644_v20 }
 0x2d6   :  { %v707_v24 = vmax.f32 %v703_v21, 0.0 }
 0x2db   :  { %v704_v22 = vpop.f32.mrf.mxu1 }
 0x2dc   :  { %v705_v23 = vadd.f32 %v704_v22, %v644_v20 }
 0x2de   :  { %v708_v25 = vmax.f32 %v705_v23, 0.0 }
 0x2e0   :  { %v709_v26 = vpack.c.bf16 %v708_v25, %v707_v24 }
 0x2e2   :  { %783 = vmatmul.bf16.vlgmr.msra.gmra.mxu2 %v709_v26 }
 0x365   :  { %v784_v27 = vpop.f32.mrf.mxu2 }
 0x366   :  { %v785_v30 = vadd.f32 %v784_v27, %v726_v28 }
 0x36d   :  { %v786_v29 = vpop.f32.mrf.mxu2 }
 0x36e   :  { %v787_v31 = vadd.f32 %v786_v29, %v726_v28 }
 0x370   :  { %v1190_v32 = vpack.c.bf16 %v787_v31, %v785_v30 }
 0x372   :  { %1191 = vst [vmem:[%s1317_s4] sm:$0xff] %v1190_v32  }
 0x373   :  { %797 = vsyncpa [#allocation3], 1 }
 0x374   :  { %798 = vsyncpa [#allocation5], 1 }

</bundles_post_ra>
